<compile_context>
chip_gen: v7x
topology: tpu7x:2x2x1
jax: 0.10.0
libtpu: 0.0.40
codegen_flags: <defaults>
</compile_context>

<pallas_src>
import numpy as np

import jax
import jax.numpy as jnp
from jax.experimental import pallas as pl
from jax.experimental.pallas import tpu as pltpu


SQRT_HALF = 0.7071067811865476
_VMEM_CAP = 48 * 2**20          # safe on v7x (64 MiB physical per TC)


def _gelu_exact(x):
    # nn.GELU() default (approximate='none'), erf-based, evaluated in f32.
    return 0.5 * x * (1.0 + jax.lax.erf(x * SQRT_HALF))


def _round_up(a, m):
    return ((a + m - 1) // m) * m


def _divisor_chunk(hidden, target):
    """Largest multiple-of-128 divisor of `hidden` that is <= target, else full."""
    if hidden <= target or hidden % 128 != 0:
        return hidden
    for c in range(target - target % 128, 0, -128):
        if hidden % c == 0:
            return c
    return hidden


def _vmem_need(tr, dim, hc, out_dim, xb, wb, single_k):
    need = (2 * tr * dim * xb                           # x tile (dbl buffered)
            + 2 * dim * hc * wb                         # W1 chunk
            + 2 * hc * out_dim * wb                     # W2 chunk
            + 2 * 8 * _round_up(hc, 128) * 4            # b1 (layout-padded)
            + 2 * 8 * _round_up(out_dim, 128) * 4       # b2 (layout-padded)
            + 2 * tr * out_dim * xb)                    # output tile
    if not single_k:
        need += tr * out_dim * 4                        # f32 accumulator
    return need


# ---------------------------------------------------------------------------
# kernels
# ---------------------------------------------------------------------------
def _ff_kernel_fused(x_ref, w1_ref, b1_ref, w2_ref, b2_ref, o_ref):
    """Whole hidden dim resident: single fused body, no scratch."""
    lhs = x_ref[...].astype(w1_ref.dtype)
    h = jnp.dot(lhs, w1_ref[...], preferred_element_type=jnp.float32)
    h = _gelu_exact(h + b1_ref[...])                    # bias + GELU in f32
    y = jnp.dot(h.astype(w2_ref.dtype), w2_ref[...],
                preferred_element_type=jnp.float32)
    o_ref[...] = (y + b2_ref[...]).astype(o_ref.dtype)


def _ff_kernel_chunked(x_ref, w1_ref, b1_ref, w2_ref, b2_ref, o_ref, acc_ref):
    """Hidden dim split over the last ("arbitrary") grid axis with f32 acc."""
    k = pl.program_id(1)

    @pl.when(k == 0)
    def _():
        acc_ref[...] = jnp.zeros_like(acc_ref)

    # (TILE_ROWS, dim) @ (dim, H_CHUNK) -> f32 on the MXU
    lhs = x_ref[...].astype(w1_ref.dtype)
    h = jnp.dot(lhs, w1_ref[...], preferred_element_type=jnp.float32)
    h = _gelu_exact(h + b1_ref[...])                    # bias + GELU in f32

    # (TILE_ROWS, H_CHUNK) @ (H_CHUNK, dim) accumulated in f32
    acc_ref[...] += jnp.dot(h.astype(w2_ref.dtype), w2_ref[...],
                            preferred_element_type=jnp.float32)

    @pl.when(k == pl.num_programs(1) - 1)
    def _():
        o_ref[...] = (acc_ref[...] + b2_ref[...]).astype(o_ref.dtype)


# ---------------------------------------------------------------------------
# wrapper
# ---------------------------------------------------------------------------
def feed_forward(x, w1, b1, w2, b2, *, tile_rows=256, hidden_chunk=512,
                 mxu_dtype=None):
    """y = GELU(x @ w1 + b1) @ w2 + b2, applied over the last axis of x."""
    dim, hidden = w1.shape
    out_dim = w2.shape[1]
    assert w2.shape[0] == hidden and x.shape[-1] == dim

    if mxu_dtype is not None:                 # bf16 MXU operands (v6e/v7x win)
        w1 = w1.astype(mxu_dtype)
        w2 = w2.astype(mxu_dtype)
    b1 = b1.reshape(1, hidden).astype(jnp.float32)
    b2 = b2.reshape(1, out_dim).astype(jnp.float32)

    lead = x.shape[:-1]
    rows = int(np.prod(lead)) if lead else 1
    x2 = x.reshape(rows, dim)

    # Row tile: multiple of 8 sublanes, capped at tile_rows; pad rows to fit.
    tr = min(tile_rows, _round_up(rows, 8))
    xb = x2.dtype.itemsize
    wb = w1.dtype.itemsize

    # Hidden chunk: multiple-of-128 divisor of hidden (or full extent); shrink
    # chunk then row tile until the double-buffered working set fits VMEM.
    hc = _divisor_chunk(hidden, hidden_chunk)
    while (hc < hidden and hc > 128
           and _vmem_need(tr, dim, hc, out_dim, xb, wb, False) > _VMEM_CAP):
        hc = _divisor_chunk(hidden, hc - 128)
    single_k = (hc == hidden)
    while (tr > 8
           and _vmem_need(tr, dim, hc, out_dim, xb, wb, single_k) > _VMEM_CAP):
        tr = max(8, _round_up(tr // 2, 8))

    rows_p = _round_up(rows, tr)
    if rows_p != rows:
        x2 = jnp.pad(x2, ((0, rows_p - rows), (0, 0)))

    need = _vmem_need(tr, dim, hc, out_dim, xb, wb, single_k)
    vmem_limit = int(min(64 * 2**20, max(2 * need, 4 * 2**20)))

    if single_k:
        # ---- fast path: 1-D grid over row tiles, fully fused body ----
        out = pl.pallas_call(
            _ff_kernel_fused,
            out_shape=jax.ShapeDtypeStruct((rows_p, out_dim), x.dtype),
            grid=(rows_p // tr,),
            in_specs=[
                pl.BlockSpec((tr, dim), lambda r: (r, 0)),          # x
                pl.BlockSpec((dim, hidden), lambda r: (0, 0)),      # W1
                pl.BlockSpec((1, hidden), lambda r: (0, 0)),        # b1
                pl.BlockSpec((hidden, out_dim), lambda r: (0, 0)),  # W2
                pl.BlockSpec((1, out_dim), lambda r: (0, 0)),       # b2
            ],
            out_specs=pl.BlockSpec((tr, out_dim), lambda r: (r, 0)),
            compiler_params=pltpu.CompilerParams(
                dimension_semantics=("parallel",),
                vmem_limit_bytes=vmem_limit),
        )(x2, w1, b1, w2, b2)
    else:
        # ---- chunked path: reduction over hidden chunks on the last axis ----
        grid = (rows_p // tr, hidden // hc)
        out = pl.pallas_call(
            _ff_kernel_chunked,
            out_shape=jax.ShapeDtypeStruct((rows_p, out_dim), x.dtype),
            grid=grid,
            in_specs=[
                pl.BlockSpec((tr, dim), lambda r, k: (r, 0)),       # x (const in k)
                pl.BlockSpec((dim, hc), lambda r, k: (0, k)),       # W1 chunk
                pl.BlockSpec((1, hc), lambda r, k: (0, k)),         # b1 chunk
                pl.BlockSpec((hc, out_dim), lambda r, k: (k, 0)),   # W2 chunk
                pl.BlockSpec((1, out_dim), lambda r, k: (0, 0)),    # b2
            ],
            out_specs=pl.BlockSpec((tr, out_dim), lambda r, k: (r, 0)),
            scratch_shapes=[pltpu.VMEM((tr, out_dim), jnp.float32)],
            compiler_params=pltpu.CompilerParams(
                dimension_semantics=("parallel", "arbitrary"),
                vmem_limit_bytes=vmem_limit),
        )(x2, w1, b1, w2, b2)

    if rows_p != rows:
        out = out[:rows]
    return out.reshape(*lead, out_dim)


# ---------------------------------------------------------------------------
# pure-JAX reference
# ---------------------------------------------------------------------------
def ref_forward(x, w1, b1, w2, b2):
    h = x @ w1 + b1
    h = 0.5 * h * (1.0 + jax.lax.erf(h * SQRT_HALF))
    return h @ w2 + b2


if __name__ == "__main__":
    key = jax.random.PRNGKey(0)

    def init(k, dim, hidden):
        k1, k2, k3, k4 = jax.random.split(k, 4)
        bw1 = 1.0 / np.sqrt(dim)       # nn.Linear default init bounds
        bw2 = 1.0 / np.sqrt(hidden)
        w1 = jax.random.uniform(k1, (dim, hidden), jnp.float32, -bw1, bw1)
        b1 = jax.random.uniform(k2, (hidden,), jnp.float32, -bw1, bw1)
        w2 = jax.random.uniform(k3, (hidden, dim), jnp.float32, -bw2, bw2)
        b2 = jax.random.uniform(k4, (dim,), jnp.float32, -bw2, bw2)
        return w1, b1, w2, b2

    kx, kp, kx2, kp2 = jax.random.split(key, 4)

    # --- small shape implied by the module: batch=2, seq=8, dim=32, hidden=64
    # (exercises the fused fast path)
    B, N, dim, hidden = 2, 8, 32, 64
    x = jax.random.normal(kx, (B, N, dim), jnp.float32)
    w1, b1, w2, b2 = init(kp, dim, hidden)
    out = jax.block_until_ready(feed_forward(x, w1, b1, w2, b2))
    ref = ref_forward(x, w1, b1, w2, b2)
    np.testing.assert_allclose(np.asarray(out), np.asarray(ref),
                               rtol=1e-4, atol=1e-5)

    # --- larger case exercising row tiles + the hidden-chunk reduction axis
    B2, N2, dim2, hidden2 = 4, 64, 128, 256
    x2 = jax.random.normal(kx2, (B2, N2, dim2), jnp.float32)
    p2 = init(kp2, dim2, hidden2)
    out2 = jax.block_until_ready(
        feed_forward(x2, *p2, tile_rows=64, hidden_chunk=128))
    ref2 = ref_forward(x2, *p2)
    np.testing.assert_allclose(np.asarray(out2), np.asarray(ref2),
                               rtol=1e-4, atol=1e-4)

    # --- bf16 MXU operands with f32 accumulation (v6e/v7x recommendation)
    out_bf16 = jax.block_until_ready(
        feed_forward(x2, *p2, tile_rows=64, hidden_chunk=128,
                     mxu_dtype=jnp.bfloat16))
    np.testing.assert_allclose(np.asarray(out_bf16), np.asarray(ref2),
                               rtol=1e-1, atol=1e-1)

    # TODO(synk): stochastic dropout (p>0) not implemented; module default p=0.0
    # makes nn.Dropout an identity.
    print("KERNEL_OK")
</pallas_src>

<mosaic_0001>
module attributes {stable_mosaic.version = 11 : i64} {
  func.func @_ff_kernel_fused(%arg0: i32, %arg1: memref<16x32xf32, #tpu.memory_space<vmem>>, %arg2: memref<32x64xf32, #tpu.memory_space<vmem>>, %arg3: memref<1x64xf32, #tpu.memory_space<vmem>>, %arg4: memref<64x32xf32, #tpu.memory_space<vmem>>, %arg5: memref<1x32xf32, #tpu.memory_space<vmem>>, %arg6: memref<16x32xf32, #tpu.memory_space<vmem>>) attributes {dimension_semantics = [#tpu.dimension_semantics<parallel>], iteration_bounds = array<i64: 1>, scalar_prefetch = 0 : i64, scratch_operands = 0 : i64, tpu.core_type = #tpu.core_type<tc>, window_params = [{transform_indices = @transform_0, window_bounds = array<i64: 16, 32>}, {pipeline_mode = #tpu.pipeline_mode<synchronous>, transform_indices = @transform_1, window_bounds = array<i64: 32, 64>}, {pipeline_mode = #tpu.pipeline_mode<synchronous>, transform_indices = @transform_2, window_bounds = array<i64: 1, 64>}, {pipeline_mode = #tpu.pipeline_mode<synchronous>, transform_indices = @transform_3, window_bounds = array<i64: 64, 32>}, {pipeline_mode = #tpu.pipeline_mode<synchronous>, transform_indices = @transform_4, window_bounds = array<i64: 1, 32>}, {transform_indices = @transform_5, window_bounds = array<i64: 16, 32>}]} {
    %c0 = arith.constant 0 : index
    %c0_0 = arith.constant 0 : index
    %0 = vector.load %arg1[%c0, %c0_0] : memref<16x32xf32, #tpu.memory_space<vmem>>, vector<16x32xf32>
    %c0_1 = arith.constant 0 : index
    %c0_2 = arith.constant 0 : index
    %1 = vector.load %arg2[%c0_1, %c0_2] : memref<32x64xf32, #tpu.memory_space<vmem>>, vector<32x64xf32>
    %cst = arith.constant dense<0.000000e+00> : vector<16x64xf32>
    %2 = tpu.matmul %0, %1, %cst {dimension_numbers = #tpu.dot_dimension_numbers<[1], [0], [0], [1], [0, 0, 1, 1], [], []>} : vector<16x32xf32>, vector<32x64xf32>, vector<16x64xf32> -> vector<16x64xf32>
    %c0_3 = arith.constant 0 : index
    %c0_4 = arith.constant 0 : index
    %3 = vector.load %arg3[%c0_3, %c0_4] : memref<1x64xf32, #tpu.memory_space<vmem>>, vector<1x64xf32>
    %4 = vector.broadcast %3 : vector<1x64xf32> to vector<16x64xf32>
    %5 = arith.addf %2, %4 : vector<16x64xf32>
    %cst_5 = arith.constant 5.000000e-01 : f32
    %6 = vector.broadcast %cst_5 : f32 to vector<16x64xf32>
    %7 = arith.mulf %6, %5 : vector<16x64xf32>
    %cst_6 = arith.constant 0.707106769 : f32
    %8 = vector.broadcast %cst_6 : f32 to vector<16x64xf32>
    %9 = arith.mulf %5, %8 : vector<16x64xf32>
    %10 = math.erf %9 : vector<16x64xf32>
    %cst_7 = arith.constant 1.000000e+00 : f32
    %11 = vector.broadcast %cst_7 : f32 to vector<16x64xf32>
    %12 = arith.addf %11, %10 : vector<16x64xf32>
    %13 = arith.mulf %7, %12 : vector<16x64xf32>
    %c0_8 = arith.constant 0 : index
    %c0_9 = arith.constant 0 : index
    %14 = vector.load %arg4[%c0_8, %c0_9] : memref<64x32xf32, #tpu.memory_space<vmem>>, vector<64x32xf32>
    %cst_10 = arith.constant dense<0.000000e+00> : vector<16x32xf32>
    %15 = tpu.matmul %13, %14, %cst_10 {dimension_numbers = #tpu.dot_dimension_numbers<[1], [0], [0], [1], [0, 0, 1, 1], [], []>} : vector<16x64xf32>, vector<64x32xf32>, vector<16x32xf32> -> vector<16x32xf32>
    %c0_11 = arith.constant 0 : index
    %c0_12 = arith.constant 0 : index
    %16 = vector.load %arg5[%c0_11, %c0_12] : memref<1x32xf32, #tpu.memory_space<vmem>>, vector<1x32xf32>
    %17 = vector.broadcast %16 : vector<1x32xf32> to vector<16x32xf32>
    %18 = arith.addf %15, %17 : vector<16x32xf32>
    %c0_13 = arith.constant 0 : index
    %c0_14 = arith.constant 0 : index
    %19 = vector.load %arg6[%c0_13, %c0_14] : memref<16x32xf32, #tpu.memory_space<vmem>>, vector<16x32xf32>
    tpu.vector_store %arg6[%c0_13, %c0_14], %18 {strides = array<i32>} : memref<16x32xf32, #tpu.memory_space<vmem>>, vector<16x32xf32>,
    return
  }
  func.func @transform_0(%arg0: i32) -> (i32, i32) {
    %c0_i32 = arith.constant 0 : i32
    %c0_i32_0 = arith.constant 0 : i32
    return %arg0, %c0_i32 : i32, i32
  }
  func.func @transform_1(%arg0: i32) -> (i32, i32) {
    %c0_i32 = arith.constant 0 : i32
    %c0_i32_0 = arith.constant 0 : i32
    %c0_i32_1 = arith.constant 0 : i32
    return %c0_i32, %c0_i32_0 : i32, i32
  }
  func.func @transform_2(%arg0: i32) -> (i32, i32) {
    %c0_i32 = arith.constant 0 : i32
    %c0_i32_0 = arith.constant 0 : i32
    %c0_i32_1 = arith.constant 0 : i32
    return %c0_i32, %c0_i32_0 : i32, i32
  }
  func.func @transform_3(%arg0: i32) -> (i32, i32) {
    %c0_i32 = arith.constant 0 : i32
    %c0_i32_0 = arith.constant 0 : i32
    %c0_i32_1 = arith.constant 0 : i32
    return %c0_i32, %c0_i32_0 : i32, i32
  }
  func.func @transform_4(%arg0: i32) -> (i32, i32) {
    %c0_i32 = arith.constant 0 : i32
    %c0_i32_0 = arith.constant 0 : i32
    %c0_i32_1 = arith.constant 0 : i32
    return %c0_i32, %c0_i32_0 : i32, i32
  }
  func.func @transform_5(%arg0: i32) -> (i32, i32) {
    %c0_i32 = arith.constant 0 : i32
    %c0_i32_0 = arith.constant 0 : i32
    return %arg0, %c0_i32 : i32, i32
  }
}

</mosaic_0001>

<bundles_post_ra>
// kernel: tpu_custom_call.1
= control target key start
LH: loop header
LB: loop body
LE: loop exit
PB: predicated region body
PF: predicated region fallthrough
CT: control target
= control target key end

     0   :  { %vm34_vm0 = vcmask 261120   ;;  %s445_s0 = inlined_call_operand.vmem [shape: f32[16,32], index: 0, kind: input, shape index: {}]   ;;  %s446_s1 = inlined_call_operand.vmem [shape: f32[32,64], index: 1, kind: input, shape index: {}]   ;;  %s447_s2 = inlined_call_operand.vmem [shape: f32[1,64], index: 2, kind: input, shape index: {}]   ;;  %s448_s3 = inlined_call_operand.vmem [shape: f32[64,32], index: 3, kind: input, shape index: {}]   ;;  %s449_s4 = inlined_call_operand.vmem [shape: f32[1,32], index: 4, kind: input, shape index: {}]   ;;  %s450_s5 = inlined_call_operand.hbm [shape: f32[16,32], index: 5, kind: output, shape index: {}]  }
   0x1   :  { %v23_v0 = vld [vmem:[%s446_s1] sm:$0xff]  ;;  %v24_v1 = vld [vmem:[%s446_s1 + $0x8] sm:$0xff]  ;;  %v25_v2 = vld [vmem:[%s446_s1 + $0x10] sm:$0xff] }
   0x2   :  { %v293_v3 = vpack.c.bf16 %v24_v1, %v23_v0  ;;  %v26_v4 = vld [vmem:[%s446_s1 + $0x18] sm:$0xff]  ;;  %v21_v5 = vld [vmem:[%s445_s0] sm:$0xff] }
   0x3   :  { %v297_v6 = vpack.c.bf16 %v26_v4, %v25_v2  ;;  %271 = vmatprep.mubr.msk.f32.mxu0 %vm34_vm0, %v21_v5 }
   0x4   :  { %10 = vsyncpa [#allocation3], 0  ;;  %294 = vmatprep.subr.bf16.mxu0 %v293_v3  ;;  %v22_v7 = vld [vmem:[%s445_s0 + $0x8] sm:$0xff]  ;;  %v126_v8 = vld [vmem:[%s448_s3] sm:$0xff]  ;;  %vm141_vm1 = vcmask 523264   ;;  %s348_s21 = smov [#allocation2]  }
   0x5   :  { %296 = vmatpush3.bf16.msra.mxu0 %v293_v3  ;;  %v127_v9 = vld [vmem:[%s448_s3 + $0x8] sm:$0xff]  ;;  %v128_v11 = vld [vmem:[%s448_s3 + $0x10] sm:$0xff]  ;;  %v129_v12 = vld [vmem:[%s448_s3 + $0x18] sm:$0xff]  ;;  %s230_s22 = sshll.u32 %s348_s21, 4  ;;  %s231_s22 = int_to_ptr.vmem [resolvable:$true] %s230_s22 }
   0x6   :  { %298 = vmatprep.subr.bf16.mxu0 %v297_v6  ;;  %v301_v10 = vpack.c.bf16 %v127_v9, %v126_v8  ;;  %v305_v13 = vpack.c.bf16 %v129_v12, %v128_v11  ;;  %v130_v14 = vld [vmem:[%s448_s3 + $0x20] sm:$0xff]  ;;  %v131_v15 = vld [vmem:[%s448_s3 + $0x28] sm:$0xff]  ;;  %v132_v17 = vld [vmem:[%s448_s3 + $0x30] sm:$0xff]  ;;  %s324_s23 = scalar_lea.vmem %s231_s22, 256  ;;  %p329_p1 = scmp.lt.s32.totalorder %s231_s22, %s231_s22 }
   0x7   :  { %v309_v16 = vpack.c.bf16 %v131_v15, %v130_v14  ;;  %v133_v18 = vld [vmem:[%s448_s3 + $0x38] sm:$0xff]  ;;  %v241_v20 = vld [vmem:[%s447_s2] ss:$0 sm:$0xff]  ;;  %p325_p0 = scmp.ne.s32.totalorder %s231_s22, %s324_s23  ;;  %p330_p2 = scmp.lt.s32.totalorder %s324_s23, %s324_s23 }
   0x8   :  { %302 = vmatprep.subr.bf16.mxu1 %v301_v10  ;;  %v313_v19 = vpack.c.bf16 %v133_v18, %v132_v17  ;;  %v244_v35 = vld [vmem:[%s449_s4] ss:$0 sm:$0xff] }
   0x9   :  { %300 = vmatpush3.bf16.msra.mxu0 %v297_v6  ;;  %304 = vmatpush3.bf16.msra.mxu1 %v301_v10  ;;  %p331_p3 = por %p330_p2, %p329_p1 }
   0xa   :  { %306 = vmatprep.subr.bf16.mxu1 %v305_v13 }
   0xb   :  { %p332_p4 = pnand %p331_p3, %p325_p0 }
   0xc   :  { %272 = vmatmul.mubr.msk.f32.vlgmr.msra.gmra.mrb[0].mxu0 %vm34_vm0, %v22_v7 }
   0xd   :  { %308 = vmatpush3.bf16.msra.mxu1 %v305_v13 }
   0xe   :  { %310 = vmatprep.subr.bf16.mxu1 %v309_v16 }
  0x11   :  { %312 = vmatpush3.bf16.msra.mxu1 %v309_v16 }
  0x12   :  { %314 = vmatprep.subr.bf16.mxu1 %v313_v19 }
  0x15   :  { %316 = vmatpush3.bf16.msra.mxu1 %v313_v19 }
  0xdf   :  { %v273_v21 = vpop.f32.mrb[0].mxu0 }
  0xe0   :  { %v113_v22 = vadd.f32 %v273_v21, %v241_v20  ;;  %v107_v23 = vpop.f32.mrb[1].mxu0 }
  0xe1   :  { %v108_v24 = vadd.f32 %v241_v20, %v107_v23 }
  0xe2   :  { %v119_v25 = vmul.f32 0.70710677, %v113_v22  ;;  %v117_v32 = vmul.f32 0.5, %v113_v22 }
  0xe3   :  { %v118_v26 = vmul.f32 0.70710677, %v108_v24  ;;  %v116_v30 = vmul.f32 0.5, %v108_v24 }
  0xe4   :  { %320 = verf.f32 %v119_v25 }
  0xe5   :  { %322 = verf.f32 %v118_v26 }
  0xee   :  { %v321_v27 = vpop.eup %320 }
  0xef   :  { %v323_v28 = vpop.eup %322  ;;  %v123_v29 = vadd.f32 1.0, %v321_v27 }
  0xf0   :  { %v122_v31 = vadd.f32 1.0, %v323_v28 }
  0xf1   :  { %v125_v34 = vmul.f32 %v123_v29, %v117_v32 }
  0xf2   :  { %v124_v33 = vmul.f32 %v122_v31, %v116_v30 }
  0xf4   :  { %290 = vmatprep.mubr.msk.f32.mxu1 %vm141_vm1, %v124_v33 }
  0xf5   :  { %291 = vmatmul.mubr.msk.f32.vlgmr.msra.gmra.mrb[0].mxu1 %vm141_vm1, %v125_v34 }
 0x1c8   :  { %v292_v36 = vpop.f32.mrb[0].mxu1 }
 0x1c9   :  { %v220_v37 = vadd.f32 %v292_v36, %v244_v35  ;;  %v214_v38 = vpop.f32.mrb[1].mxu1 }
 0x1ca   :  { %v215_v39 = vadd.f32 %v244_v35, %v214_v38 }
 0x1cb   :  { %224 = vst.msk [vmem:[#allocation2 + $0x8] sm:$0xff] %vm34_vm0, %v220_v37 }
 0x1cc   :  { %223 = vst.msk [vmem:[#allocation2] sm:$0xff] %vm34_vm0, %v215_v39 }
 0x1cd   :  { %335 = shalt.err (!%p332_p4)
}
 0x1ce   :  { %s336_s25 = scalar_lea.hbm %s450_s5, 256 }
 0x1cf   :  { %p337_p5 = scmp.ne.s32.totalorder %s450_s5, %s336_s25  ;;  %p340_p6 = scmp.lt.u32.totalorder %s336_s25, %s450_s5 }
 0x1d1   :  { %p342_p7 = pnand %p340_p6, %p337_p5 }
 0x1d3   :  { %345 = shalt.err (!%p342_p7)
}
 0x1d4   :  { %s349_s30 = smov 128   ;;  %s350_s1 = smov 8  }
 0x1d5   :  { %236 = dma.vmem_to_hbm [thread:$0]  %s231_s22, 256, %s450_s5, [#allocation3], %s349_s30, %s349_s30, %s350_s1  }
 0x1d6   :  { %346 = dma.done.wait [#allocation3], 256  }
 0x1d7   :  { %347 = vsyncadd [#allocation3], 4294967040 }
 0x1d8   :  { %240 = vsyncpa [#allocation3], 1 }

</bundles_post_ra>
